<compile_context>
chip_gen: v6e
topology: v6e:2x2x1
jax: 0.10.0
libtpu: 0.0.40
codegen_flags: <defaults>
</compile_context>

<pallas_src>
from collections import OrderedDict

import jax
import jax.numpy as jnp
from jax.experimental import pallas as pl
from jax.experimental.pallas import tpu as pltpu

LANE = 128             # vreg lane width
MAX_BLOCK_ROWS = 2048  # 2048 x 128 x 4 B = 1 MiB per f32 tile (2 MiB double-buffered)


def _round_up(x, m):
    return ((x + m - 1) // m) * m


def _fused_sum_kernel(flush_ref, x_ref, o_ref, acc_ref):
    """Per-tensor sums of a packed (rows, 128) slab.

    flush_ref : SMEM int32[num_blocks] -- tensor id if this grid block is the
                LAST block of its tensor, else -1
    x_ref     : VMEM (ROW_BLOCK, 128)  -- current block of the packed slab
    o_ref     : SMEM f32[num_tensors]  -- per-tensor sums (resident output)
    acc_ref   : VMEM f32[8, 128]       -- running vreg accumulator
    """
    i = pl.program_id(0)

    @pl.when(i == 0)
    def _init():
        acc_ref[...] = jnp.zeros_like(acc_ref)
        for t in range(o_ref.shape[0]):           # static, small
            o_ref[t] = jnp.float32(0.0)

    # Fold the (ROW_BLOCK, 128) block into the (8, 128) accumulator with pure
    # VPU adds (no per-step cross-lane reduce); upcast happens in-register.
    block = x_ref[...].astype(jnp.float32)
    rb = block.shape[0]
    acc_ref[...] += jnp.sum(block.reshape(rb // 8, 8, LANE), axis=0)

    # Flush once per tensor: the host precomputed which block is the last one
    # of each tensor, so only a single SMEM scalar read gates the cold path.
    ft = flush_ref[i]

    @pl.when(ft >= 0)
    def _flush():
        total = jnp.sum(acc_ref[...])             # single XLU reduce per tensor
        for t in range(o_ref.shape[0]):           # static unroll; one branch taken
            @pl.when(ft == t)
            def _(t=t, total=total):
                o_ref[t] = o_ref[t] + total
        acc_ref[...] = jnp.zeros_like(acc_ref)


def _fused_means(tensors):
    """Per-tensor means for a list of arrays, via a single Pallas reduction."""
    num_t = len(tensors)
    if num_t == 0:
        return jnp.zeros((0,), jnp.float32)

    common = jnp.result_type(*tensors)            # no cast pass unless dtypes mix
    counts = [int(t.size) for t in tensors]
    rows = [int(pl.cdiv(max(n, 1), LANE)) for n in counts]
    total_rows = sum(rows)

    # Start from the largest tensor (amortise per-grid-step overhead), then
    # shrink while zero padding of smaller tensors would dominate real data.
    row_block = int(min(_round_up(max(rows), 8), MAX_BLOCK_ROWS))

    def _padded_rows(rb):
        return sum(_round_up(r, rb) for r in rows)

    pad_budget = max(total_rows + total_rows // 4, 8 * num_t)
    while row_block > 8 and _padded_rows(row_block) > pad_budget:
        row_block = max(8, _round_up(row_block // 2, 8))

    parts, flush_tid = [], []
    for t_idx, t in enumerate(tensors):
        flat = jnp.ravel(t).astype(common)        # no-op when dtype matches
        rows_p = _round_up(rows[t_idx], row_block)
        pad = rows_p * LANE - counts[t_idx]
        parts.append(flat)
        if pad:
            parts.append(jnp.zeros((pad,), common))  # zeros don't change sums
        nblk = rows_p // row_block
        flush_tid.extend([-1] * (nblk - 1) + [t_idx])

    flat_all = parts[0] if len(parts) == 1 else jnp.concatenate(parts)
    num_blocks = len(flush_tid)
    slab = flat_all.reshape(num_blocks * row_block, LANE)
    flush_arr = jnp.asarray(flush_tid, dtype=jnp.int32)

    sums = pl.pallas_call(
        _fused_sum_kernel,
        out_shape=jax.ShapeDtypeStruct((num_t,), jnp.float32),
        grid_spec=pltpu.PrefetchScalarGridSpec(
            num_scalar_prefetch=1,
            grid=(num_blocks,),
            in_specs=[pl.BlockSpec((row_block, LANE), lambda i, flush: (i, 0))],
            out_specs=pl.BlockSpec(memory_space=pltpu.SMEM),
            scratch_shapes=[pltpu.VMEM((8, LANE), jnp.float32)],
        ),
        # Carried accumulator => the single grid axis must stay "arbitrary".
        compiler_params=pltpu.CompilerParams(
            dimension_semantics=("arbitrary",)),
    )(flush_arr, slab)

    return sums / jnp.asarray(counts, dtype=jnp.float32)


def sum_loss_forward(losses, target=None, dynamic_loss_weight=None):
    """Pallas-backed equivalent of SumLoss.forward."""
    if not isinstance(losses, (dict, OrderedDict)):
        return None

    entries, tensors = [], []
    for loss_name, loss_value in losses.items():
        if isinstance(loss_value, (list, tuple)):
            idxs = []
            for v in loss_value:
                if not (isinstance(v, jax.Array) or hasattr(v, "shape")):
                    raise TypeError(
                        "{} is not a tensor or list of tensors".format(loss_name))
                idxs.append(len(tensors))
                tensors.append(jnp.asarray(v))
            entries.append((loss_name, idxs))
        elif isinstance(loss_value, jax.Array) or hasattr(loss_value, "shape"):
            entries.append((loss_name, [len(tensors)]))
            tensors.append(jnp.asarray(loss_value))
        else:
            raise TypeError(
                "{} is not a tensor or list of tensors".format(loss_name))

    # ONE kernel launch for every tensor in the dict (matches log_vars).
    means = _fused_means(tensors)

    log_vars = OrderedDict()
    for name, idxs in entries:
        val = means[idxs[0]]
        for j in idxs[1:]:
            val = val + means[j]
        log_vars[name] = val

    init_loss = [v for k, v in log_vars.items() if "loss" in k]

    if dynamic_loss_weight is not None:
        # adaptive_muti_loss path (weights supplied in-script).
        # TODO(synk): FileOps.dump_pickle of the loss history has no Pallas /
        # in-kernel equivalent and is intentionally omitted.
        if len(dynamic_loss_weight) != len(init_loss):
            raise ValueError(
                "The length of the loss must be same with the length of the "
                "weight, but got {} and {}".format(
                    len(init_loss), len(dynamic_loss_weight)))
        weighted = [jnp.float32(dynamic_loss_weight[i]) * init_loss[i]
                    for i in range(len(init_loss))]
        sum_loss = sum(weighted)
    else:
        sum_loss = sum(init_loss)
    return sum_loss


if __name__ == "__main__":
    key = jax.random.PRNGKey(0)
    k1, k2, k3, k4 = jax.random.split(key, 4)

    # Small, deterministic "losses" dict (SumLoss has no parameters of its own).
    losses = OrderedDict(
        cls_loss=jax.random.normal(k1, (2, 4, 16, 16), dtype=jnp.float32) ** 2,
        reg_loss=[jax.random.normal(k2, (8, 32), dtype=jnp.float32) ** 2,
                  jax.random.normal(k3, (2, 16), dtype=jnp.float32) ** 2],
        accuracy=jax.random.uniform(k4, (2,), dtype=jnp.float32),  # no 'loss' -> excluded
    )

    out = sum_loss_forward(losses)
    out = jax.block_until_ready(out)

    # Pure-JAX reference for correctness.
    ref = (jnp.mean(losses["cls_loss"])
           + jnp.mean(losses["reg_loss"][0])
           + jnp.mean(losses["reg_loss"][1]))
    assert out.shape == (), f"expected scalar, got {out.shape}"
    assert jnp.allclose(out, ref, rtol=1e-5, atol=1e-6), (out, ref)

    # Also exercise the dynamic_loss_weight branch.
    out_w = sum_loss_forward(losses, dynamic_loss_weight=[0.5, 2.0])
    out_w = jax.block_until_ready(out_w)
    ref_w = (0.5 * jnp.mean(losses["cls_loss"])
             + 2.0 * (jnp.mean(losses["reg_loss"][0])
                      + jnp.mean(losses["reg_loss"][1])))
    assert jnp.allclose(out_w, ref_w, rtol=1e-5, atol=1e-6), (out_w, ref_w)

    print("KERNEL_OK")
</pallas_src>

<mosaic_0001>
module attributes {stable_mosaic.version = 11 : i64} {
  func.func @_fused_sum_kernel(%arg0: i32, %arg1: memref<5xi32, #tpu.memory_space<smem>>, %arg2: memref<8x128xf32, #tpu.memory_space<vmem>>, %arg3: memref<4xf32, #tpu.memory_space<smem>>, %arg4: memref<8x128xf32, #tpu.memory_space<vmem>>) attributes {dimension_semantics = [#tpu.dimension_semantics<arbitrary>], iteration_bounds = array<i64: 5>, scalar_prefetch = 1 : i64, scratch_operands = 1 : i64, tpu.core_type = #tpu.core_type<tc>, window_params = [{transform_indices = @transform_0, window_bounds = array<i64: 8, 128>}, {transform_indices = @transform_1, window_bounds = array<i64: 4>}]} {
    %c0_i32 = arith.constant 0 : i32
    %0 = arith.cmpi eq, %arg0, %c0_i32 : i32
    %1 = arith.extui %0 : i1 to i32
    %c0_i32_0 = arith.constant 0 : i32
    %2 = arith.cmpi ne, %1, %c0_i32_0 : i32
    scf.if %2 {
      %cst_8 = arith.constant 0.000000e+00 : f32
      %14 = vector.broadcast %cst_8 : f32 to vector<8x128xf32>
      %c0_9 = arith.constant 0 : index
      %c0_10 = arith.constant 0 : index
      %15 = vector.load %arg4[%c0_9, %c0_10] : memref<8x128xf32, #tpu.memory_space<vmem>>, vector<8x128xf32>
      tpu.vector_store %arg4[%c0_9, %c0_10], %14 {strides = array<i32>} : memref<8x128xf32, #tpu.memory_space<vmem>>, vector<8x128xf32>,
      %cst_11 = arith.constant 0.000000e+00 : f32
      %c0_12 = arith.constant 0 : index
      %16 = memref.load %arg3[%c0_12] : memref<4xf32, #tpu.memory_space<smem>>
      memref.store %cst_11, %arg3[%c0_12] : memref<4xf32, #tpu.memory_space<smem>>
      %cst_13 = arith.constant 0.000000e+00 : f32
      %c1 = arith.constant 1 : index
      %17 = memref.load %arg3[%c1] : memref<4xf32, #tpu.memory_space<smem>>
      memref.store %cst_13, %arg3[%c1] : memref<4xf32, #tpu.memory_space<smem>>
      %cst_14 = arith.constant 0.000000e+00 : f32
      %c2 = arith.constant 2 : index
      %18 = memref.load %arg3[%c2] : memref<4xf32, #tpu.memory_space<smem>>
      memref.store %cst_14, %arg3[%c2] : memref<4xf32, #tpu.memory_space<smem>>
      %cst_15 = arith.constant 0.000000e+00 : f32
      %c3 = arith.constant 3 : index
      %19 = memref.load %arg3[%c3] : memref<4xf32, #tpu.memory_space<smem>>
      memref.store %cst_15, %arg3[%c3] : memref<4xf32, #tpu.memory_space<smem>>
    } else {
    }
    %c0 = arith.constant 0 : index
    %c0_1 = arith.constant 0 : index
    %3 = vector.load %arg2[%c0, %c0_1] : memref<8x128xf32, #tpu.memory_space<vmem>>, vector<8x128xf32>
    %c0_2 = arith.constant 0 : index
    %c0_3 = arith.constant 0 : index
    %4 = vector.load %arg4[%c0_2, %c0_3] : memref<8x128xf32, #tpu.memory_space<vmem>>, vector<8x128xf32>
    %5 = vector.shape_cast %3 : vector<8x128xf32> to vector<1x8x128xf32>
    %cst = arith.constant dense<0.000000e+00> : vector<8x128xf32>
    %6 = vector.multi_reduction <add>, %5, %cst [0] : vector<1x8x128xf32> to vector<8x128xf32>
    %7 = arith.addf %4, %6 : vector<8x128xf32>
    %c0_4 = arith.constant 0 : index
    %c0_5 = arith.constant 0 : index
    %8 = vector.load %arg4[%c0_4, %c0_5] : memref<8x128xf32, #tpu.memory_space<vmem>>, vector<8x128xf32>
    tpu.vector_store %arg4[%c0_4, %c0_5], %7 {strides = array<i32>} : memref<8x128xf32, #tpu.memory_space<vmem>>, vector<8x128xf32>,
    %9 = arith.index_cast %arg0 : i32 to index
    %10 = memref.load %arg1[%9] : memref<5xi32, #tpu.memory_space<smem>>
    %c0_i32_6 = arith.constant 0 : i32
    %11 = arith.cmpi sge, %10, %c0_i32_6 : i32
    %12 = arith.extui %11 : i1 to i32
    %c0_i32_7 = arith.constant 0 : i32
    %13 = arith.cmpi ne, %12, %c0_i32_7 : i32
    scf.if %13 {
      %c0_8 = arith.constant 0 : index
      %c0_9 = arith.constant 0 : index
      %14 = vector.load %arg4[%c0_8, %c0_9] : memref<8x128xf32, #tpu.memory_space<vmem>>, vector<8x128xf32>
      %15 = vector.shape_cast %14 : vector<8x128xf32> to vector<1x8x128xf32>
      %cst_10 = arith.constant dense<0.000000e+00> : vector<1xf32>
      %16 = vector.multi_reduction <add>, %15, %cst_10 [1, 2] : vector<1x8x128xf32> to vector<1xf32>
      %17 = vector.shape_cast %16 : vector<1xf32> to vector<1x1x1xf32>
      %18 = vector.extract %17[0, 0, 0] : f32 from vector<1x1x1xf32>
      %c0_i32_11 = arith.constant 0 : i32
      %19 = arith.cmpi eq, %10, %c0_i32_11 : i32
      %20 = arith.extui %19 : i1 to i32
      %c0_i32_12 = arith.constant 0 : i32
      %21 = arith.cmpi ne, %20, %c0_i32_12 : i32
      scf.if %21 {
        %c0_19 = arith.constant 0 : index
        %33 = memref.load %arg3[%c0_19] : memref<4xf32, #tpu.memory_space<smem>>
        %34 = arith.addf %33, %18 : f32
        %c0_20 = arith.constant 0 : index
        %35 = memref.load %arg3[%c0_20] : memref<4xf32, #tpu.memory_space<smem>>
        memref.store %34, %arg3[%c0_20] : memref<4xf32, #tpu.memory_space<smem>>
      } else {
      }
      %c1_i32 = arith.constant 1 : i32
      %22 = arith.cmpi eq, %10, %c1_i32 : i32
      %23 = arith.extui %22 : i1 to i32
      %c0_i32_13 = arith.constant 0 : i32
      %24 = arith.cmpi ne, %23, %c0_i32_13 : i32
      scf.if %24 {
        %c1 = arith.constant 1 : index
        %33 = memref.load %arg3[%c1] : memref<4xf32, #tpu.memory_space<smem>>
        %34 = arith.addf %33, %18 : f32
        %c1_19 = arith.constant 1 : index
        %35 = memref.load %arg3[%c1_19] : memref<4xf32, #tpu.memory_space<smem>>
        memref.store %34, %arg3[%c1_19] : memref<4xf32, #tpu.memory_space<smem>>
      } else {
      }
      %c2_i32 = arith.constant 2 : i32
      %25 = arith.cmpi eq, %10, %c2_i32 : i32
      %26 = arith.extui %25 : i1 to i32
      %c0_i32_14 = arith.constant 0 : i32
      %27 = arith.cmpi ne, %26, %c0_i32_14 : i32
      scf.if %27 {
        %c2 = arith.constant 2 : index
        %33 = memref.load %arg3[%c2] : memref<4xf32, #tpu.memory_space<smem>>
        %34 = arith.addf %33, %18 : f32
        %c2_19 = arith.constant 2 : index
        %35 = memref.load %arg3[%c2_19] : memref<4xf32, #tpu.memory_space<smem>>
        memref.store %34, %arg3[%c2_19] : memref<4xf32, #tpu.memory_space<smem>>
      } else {
      }
      %c3_i32 = arith.constant 3 : i32
      %28 = arith.cmpi eq, %10, %c3_i32 : i32
      %29 = arith.extui %28 : i1 to i32
      %c0_i32_15 = arith.constant 0 : i32
      %30 = arith.cmpi ne, %29, %c0_i32_15 : i32
      scf.if %30 {
        %c3 = arith.constant 3 : index
        %33 = memref.load %arg3[%c3] : memref<4xf32, #tpu.memory_space<smem>>
        %34 = arith.addf %33, %18 : f32
        %c3_19 = arith.constant 3 : index
        %35 = memref.load %arg3[%c3_19] : memref<4xf32, #tpu.memory_space<smem>>
        memref.store %34, %arg3[%c3_19] : memref<4xf32, #tpu.memory_space<smem>>
      } else {
      }
      %cst_16 = arith.constant 0.000000e+00 : f32
      %31 = vector.broadcast %cst_16 : f32 to vector<8x128xf32>
      %c0_17 = arith.constant 0 : index
      %c0_18 = arith.constant 0 : index
      %32 = vector.load %arg4[%c0_17, %c0_18] : memref<8x128xf32, #tpu.memory_space<vmem>>, vector<8x128xf32>
      tpu.vector_store %arg4[%c0_17, %c0_18], %31 {strides = array<i32>} : memref<8x128xf32, #tpu.memory_space<vmem>>, vector<8x128xf32>,
    } else {
    }
    return
  }
  func.func @transform_0(%arg0: i32, %arg1: memref<5xi32, #tpu.memory_space<smem>>) -> (i32, i32) {
    %c0_i32 = arith.constant 0 : i32
    %c0_i32_0 = arith.constant 0 : i32
    return %arg0, %c0_i32 : i32, i32
  }
  func.func @transform_1(%arg0: i32, %arg1: memref<5xi32, #tpu.memory_space<smem>>) -> i32 {
    %c0_i32 = arith.constant 0 : i32
    %c0_i32_0 = arith.constant 0 : i32
    return %c0_i32 : i32
  }
}

</mosaic_0001>

<bundles_post_ra>
// kernel: tpu_custom_call.1
= control target key start
LH: loop header
LB: loop body
LE: loop exit
PB: predicated region body
PF: predicated region fallthrough
CT: control target
= control target key end

     0   :  { %s419_s9 = smov [#allocation4]   ;;  %s551_s0 = inlined_call_operand.hbm [shape: s32[5], index: 0, kind: input, shape index: {}]   ;;  %s552_s1 = inlined_call_operand.hbm [shape: f32[40,128], index: 1, kind: input, shape index: {}]   ;;  %s553_s2 = inlined_call_operand.hbm [shape: f32[4], index: 2, kind: output, shape index: {}]  }
   0x1   :  { %8 = dma.hbm_to_smem %s551_s0, 16, %s419_s9, [#allocation3] }
   0x2   :  { %393 = dma.done.wait [#allocation3], 16 }
   0x3   :  { %394 = vsyncadd [#allocation3], 4294967280 }
   0x4   :  { %10 = sfence }
   0x5   :  { %11 = vsyncpa [#allocation6], 0 }
   0x6   :  { %13 = vsyncpa [#allocation6 + $0x1], 0 }
   0x7   :  { %14 = vsyncpa [#allocation7], 0  ;;  %s443_s12 = smov 0   ;;  %s445_s13 = smov 0  }
   0x8   :  { %s447_s14 = smov 0   ;;  %s449_s15 = smov 0  }
   0x9 LB: > { %s462_s0 = sadd.s32 4294967295, %s417_s15   ;;  %s465_s16 = sadd.s32 1, %s417_s15   ;;  %s417_s15 = sphi %s449_s15, %s563_s15   ;;  %s413_s14 = sphi %s447_s14, %s562_s14   ;;  %s409_s13 = sphi %s445_s13, %s561_s13   ;;  %s405_s12 = sphi %s443_s12, %s560_s12  }
   0xa   : > { %s24_s17 = ssub.s32 %s417_s15, %s465_s16  ;;  %s27_s18 = sadd.s32 1, %s413_s14 }
   0xb   : > { %p25_p0 = scmp.eq.s32.totalorder %s24_s17, 0  ;;  %p34_p1 = scmp.ne.s32.totalorder %s413_s14, %s409_s13 }
   0xc   : > { %p35_p2 = scmp.eq.s32.totalorder %s417_s15, 0  ;;  %p40_p3 = scmp.ne.s32.totalorder %s409_s13, %s405_s12 }
   0xd   : > { %s475_s19 = scalar_select %p25_p0, %s413_s14, %s27_s18  }
   0xe   : > { %p36_p4 = por %p35_p2, %p34_p1  ;;  %p41_p5 = scmp.eq.s32.totalorder %s462_s0, 0 }
   0xf   : > { %p287_p6 = scmp.lt.s32.totalorder %s417_s15, 5  ;;  %s85_s21 = sand.u32 1, %s413_s14  }
  0x10   : > { %p479_p7 = por %p41_p5, %p40_p3  ;;  %s250_s22 = sshll.u32 %s85_s21, 3 }
  0x11   : > { %s251_s23 = sshll.u32 %s417_s15, 7  ;;  %s89_s27 = scalar_lea.vmem [#allocation5], %s250_s22 }
  0x12   : > { %s555_s20 = scalar_select %p479_p7, 1, 0 }
  0x13   : > { %s488_s26 = scalar_lea.hbm %s552_s1, %s251_s23  ;;  %s96_s28 = sshll.u32 %s89_s27, 4  ;;  %s490_s28 = int_to_ptr.vmem [resolvable:$true] %s96_s28 }
  0x14   : > { %p492_p8 = pnand %p287_p6, %p36_p4  ;;  %s86_s30 = scalar_lea.sflag [#allocation6], %s85_s21 }
  0x15   : > { %s339_s3 = scalar_lea.hbm %s488_s26, 128  ;;  %s344_s6 = scalar_lea.hbm %s552_s1, 640 }
  0x16   : > { %p340_p11 = scmp.ne.s32.totalorder %s488_s26, %s339_s3  ;;  %p341_p12 = pneg %p492_p8 }
  0x17   : > { %p345_p1 = scmp.lt.s32.totalorder %s488_s26, %s552_s1  ;;  %p346_p2 = scmp.lt.s32.totalorder %s344_s6, %s339_s3 }
  0x18   : > { %p342_p13 = pnand %p341_p12, %p340_p11 }
  0x19   : > { %p347_p3 = por %p346_p2, %p345_p1 }
  0x1a   : > { %p343_p0 = pneg %p342_p13 }
  0x1c   : > { %p348_p4 = pnand %p347_p3, %p343_p0 }
  0x1e   : > { %351 = shalt.err (!%p348_p4)
}
  0x1f   : > { %s352_s9 = scalar_lea.vmem %s490_s28, 128  ;;  %s420_s10 = smov [#allocation5]  }
  0x20   : > { %p353_p5 = scmp.ne.s32.totalorder %s490_s28, %s352_s9  ;;  %s357_s11 = sshll.u32 %s420_s10, 4  ;;  %s358_s11 = int_to_ptr.vmem [resolvable:$false] %s357_s11 }
  0x21   : > { %s359_s12 = scalar_lea.vmem %s358_s11, 256  ;;  %p360_p13 = scmp.lt.s32.totalorder %s490_s28, %s358_s11 }
  0x22   : > { %p355_p6 = pnand %p353_p5, %p341_p12  ;;  %p361_p9 = scmp.lt.s32.totalorder %s359_s12, %s352_s9 }
  0x24   : > { %p356_p11 = pneg %p355_p6  ;;  %p362_p10 = por %p361_p9, %p360_p13 }
  0x26   : > { %p363_p7 = pnand %p362_p10, %p356_p11 }
  0x28   : > { %366 = shalt.err (!%p363_p7)
}
  0x29   : > { %286 = dma.hbm_to_vmem [thread:$0]  (!%p492_p8), %s488_s26, 128, %s490_s28, %s86_s30  }
  0x2a   : > { %p557_p0 = scmp.lt.s32.totalorder %s417_s15, 6  ;;  %p558_p1 = scmp.ge.s32.totalorder %s417_s15, 1 }
  0x2c   : > { %p102_p12 = pnand %p558_p1, %p557_p0 }
  0x2d   : > { %s107_s17 = sand.u32 (!%p102_p12), 1, %s409_s13   ;;  %p559_p9 = scmp.ne.s32.totalorder (!%p102_p12), %s555_s20, 0 }
  0x2e   : > { %105 = sbr.rel (%p102_p12) target bundleno = 292 (0x124), region = 24  ;;  %s253_s18 = sshll.u32 (!%p102_p12), %s107_s17, 3 }
  0x2f   : > { %s108_s21 = scalar_lea.sflag (!%p102_p12), [#allocation6], %s107_s17  ;;  %s111_s22 = scalar_lea.vmem (!%p102_p12), [#allocation5], %s253_s18 }
  0x33   : > { %396 = dma.done.wait (%p559_p9), %s108_s21, 128  }
  0x34   : > { %398 = vsyncadd (%p559_p9), %s108_s21, 4294967168  ;;  %p254_p7 = scmp.ne.s32.totalorder %s462_s0, 0 }
  0x35   : > { %s422_s23 = smov (!%p254_p7), 0.0  }
  0x36   : > { %128 = sbr.rel (%p254_p7) target bundleno = 61 (0x3d), region = 32  ;;  %131 = sst [smem:[#allocation8]] (!%p254_p7), %s422_s23 }
  0x37   : > { %133 = sst [smem:[#allocation8 + $0x1]] (!%p254_p7), %s422_s23 }
  0x38   : > { %135 = sst [smem:[#allocation8 + $0x2]] (!%p254_p7), %s422_s23 }
  0x39   : > { %137 = sst [smem:[#allocation8 + $0x3]] (!%p254_p7), %s422_s23 }
  0x3b   : > { %v421_v0 = vmov 0.0  }
  0x3c   : > { %129 = vst [vmem:[#allocation2] sm:$0xff] %v421_v0 }
  0x3d PF: > { %v138_v1 = vld [vmem:[%s111_s22] sm:$0xff]  ;;  %s527_s15 = sld [smem:[#allocation4 + %s462_s0]] }
  0x43   : > { %v139_v2 = vld [vmem:[#allocation2] sm:$0xff]  ;;  %p255_p8 = scmp.lt.s32.totalorder %s527_s15, 0 }
  0x44   : > { %v141_v3 = vadd.f32 %v139_v2, %v138_v1  ;;  %s162_s20 = sld [smem:[#allocation8]] (!%p255_p8)  ;;  %p288_p10 = scmp.eq.s32.totalorder (!%p255_p8), %s527_s15, 0 }
  0x45   : > { %147 = sbr.rel (%p255_p8) target bundleno = 286 (0x11e), region = 36  ;;  %s258_s24 = sld [smem:[#allocation8 + $0x1]] (!%p255_p8) }
  0x46   : > { %142 = vst [vmem:[#allocation2] sm:$0xff] %v141_v3  ;;  %s260_s25 = sld [smem:[#allocation8 + $0x2]] (!%p255_p8)  ;;  %p289_p2 = scmp.eq.s32.totalorder (!%p255_p8), %s527_s15, 1 }
  0x47   : > { %s262_s26 = sld [smem:[#allocation8 + $0x3]] (!%p255_p8)  ;;  %p290_p3 = scmp.eq.s32.totalorder (!%p255_p8), %s527_s15, 2 }
  0x48   : > { %p291_p4 = scmp.eq.s32.totalorder (!%p255_p8), %s527_s15, 3 }
  0x4a   : > { %v423_v5 = vmov 0.0  }
  0x4d   : > { %v148_v4 = vld [vmem:[#allocation2] sm:$0xff] }
  0x4e   : > { %149 = vadd.xlane.f32.xlu0 %v148_v4  ;;  %190 = vst [vmem:[#allocation2] sm:$0xff] %v423_v5 }
  0xd7   : > { %v150_v6 = vpop.xlane.xlu0 %149 }
  0xd8   : > { %v151_v7 = vrot.slane %v150_v6, 4 }
  0xda   : > { %v152_v8 = vadd.f32 %v151_v7, %v150_v6 }
  0xdc   : > { %v153_v9 = vrot.slane %v152_v8, 2 }
  0xde   : > { %v154_v10 = vadd.f32 %v153_v9, %v152_v8 }
  0xe0   : > { %v155_v11 = vrot.slane %v154_v10, 1 }
  0xe2   : > { %v156_v12 = vadd.f32 %v155_v11, %v154_v10 }
  0xe4   : > { %267 = vpush %v156_v12 }
 0x115   : > { %s268_s27 = spop %267 }
 0x116   : > { %s163_s28 = sadd.f32 %s268_s27, %s162_s20 }
 0x117   : > { %s171_s29 = sadd.f32 %s268_s27, %s258_s24 }
 0x118   : > { %272 = sst [smem:[#allocation8]] (%p288_p10), %s163_s28 }
 0x119   : > { %274 = sst [smem:[#allocation8 + $0x1]] (%p289_p2), %s171_s29 }
 0x11a   : > { %s179_s30 = sadd.f32 %s268_s27, %s260_s25 }
 0x11b   : > { %s187_s3 = sadd.f32 %s268_s27, %s262_s26 }
 0x11c   : > { %276 = sst [smem:[#allocation8 + $0x2]] (%p290_p3), %s179_s30 }
 0x11d   : > { %278 = sst [smem:[#allocation8 + $0x3]] (%p291_p4), %s187_s3 }
 0x11e PF: > { %p292_p5 = scmp.eq.s32.totalorder %s462_s0, 4  ;;  %s424_s4 = smov [#allocation8]  }
 0x120   : > { %280 = dma.smem_to_hbm (%p292_p5), %s424_s4, 16, %s553_s2, [#allocation7]  }
 0x121   : > { %400 = dma.done.wait (%p292_p5), [#allocation7], 16  }
 0x122   : > { %402 = vsyncadd (%p292_p5), [#allocation7], 4294967280 }
 0x123   : > { %204 = sfence }
 0x124 PF: > { %p17_p6 = scmp.ge.s32.totalorder %s465_s16, 7   ;;  %s560_s12 = smov %s409_s13 }
 0x125   : > { %s561_s13 = smov %s413_s14  ;;  %s562_s14 = smov %s475_s19 }
 0x126   : > { %s563_s15 = smov %s465_s16  ;;  %19 = sbr.rel (!%p17_p6) target bundleno = 9 (0x9), region = 93 }
 0x12b   :  { %210 = vsyncpa [#allocation6], 1 }
 0x12c   :  { %212 = vsyncpa [#allocation6 + $0x1], 1 }
 0x12d   :  { %213 = vsyncpa [#allocation7], 1 }
 0x12e   :  { %215 = vsyncpa [#allocation7 + $0x1], 1 }

</bundles_post_ra>
